<compile_context>
chip_gen: v6e
topology: v6e:2x2x1
jax: 0.10.0
libtpu: 0.0.40
codegen_flags: <defaults>
</compile_context>

<pallas_src>
import functools

import jax
import jax.numpy as jnp
from jax.experimental import pallas as pl
from jax.experimental.pallas import tpu as pltpu


def _gtu_kernel(x_ref, w_ref, b_ref, o_ref, *, d):
    """One row-tile of the GTUnit forward.

    x_ref : (TM, D)    input rows (native dtype)
    w_ref : (D, 2D)    fused [gate | update] weight, already (in x out)
    b_ref : (1, 2D)    fused [gate | update] bias (f32)
    o_ref : (TM, D)    output rows
    """
    x = x_ref[...]                                   # keep native dtype for the MXU

    # Single fused matmul on the MXU, f32 accumulation.
    pre = jnp.dot(x, w_ref[...], preferred_element_type=jnp.float32) + b_ref[...]

    p = jax.nn.sigmoid(pre[:, :d])                   # EUP
    q = jnp.tanh(pre[:, d:])                         # EUP

    xf = x.astype(jnp.float32)
    h = xf + p * (q - xf)                            # == p*q + (1-p)*x, 3 VPU ops

    o_ref[...] = h.astype(o_ref.dtype)


def gt_unit_forward(x, wg, bg, wu, bu, *, tile_m=512):
    """Apply GTUnit to x of shape (..., D).

    wg, wu: (D, D) weights in PyTorch Linear layout (out_features, in_features).
    bg, bu: (D,) biases.
    """
    orig_shape = x.shape
    D = orig_shape[-1]
    x2 = x.reshape(-1, D)
    M = x2.shape[0]

    # Fuse the two Linears once outside the kernel:
    #   (out, in) -> (in, out), concatenated along the output axis -> (D, 2D)
    w_cat = jnp.concatenate([wg.T, wu.T], axis=1)
    b_cat = jnp.concatenate([bg, bu]).astype(jnp.float32).reshape(1, 2 * D)

    # Row tile: big (default 512) for MXU utilization; clamp to M for small
    # inputs (full-extent block => no (8,128) divisibility requirement).
    if M <= tile_m:
        tm = M
    else:
        assert tile_m % 8 == 0, "tile_m must be a multiple of 8"
        tm = tile_m
    grid_m = pl.cdiv(M, tm)          # partial trailing block handled by Pallas

    # VMEM budget: resident fused weight + double-buffered x/out tiles +
    # headroom for f32 intermediates.  Capped at 64 MiB (v7x per-TC VMEM).
    dsize = x2.dtype.itemsize
    w_bytes = w_cat.size * w_cat.dtype.itemsize + b_cat.size * b_cat.dtype.itemsize
    io_bytes = 2 * 2 * tm * D * dsize                # x + out, double-buffered
    scratch_bytes = 6 * tm * 2 * D * 4               # f32 intermediates headroom
    vmem_limit = int(min(64 * 1024 * 1024,
                         max(32 * 1024 * 1024,
                             2 * w_bytes + io_bytes + scratch_bytes)))

    cost = pl.CostEstimate(
        flops=4 * M * D * D + 4 * M * D,
        transcendentals=2 * M * D,
        bytes_accessed=(x2.size * dsize
                        + w_cat.size * w_cat.dtype.itemsize
                        + b_cat.size * b_cat.dtype.itemsize
                        + M * D * dsize),
    )

    out = pl.pallas_call(
        functools.partial(_gtu_kernel, d=D),
        out_shape=jax.ShapeDtypeStruct((M, D), x.dtype),
        grid_spec=pltpu.PrefetchScalarGridSpec(
            num_scalar_prefetch=0,
            grid=(grid_m,),
            in_specs=[
                pl.BlockSpec((tm, D), lambda i: (i, 0)),       # x rows tile
                pl.BlockSpec((D, 2 * D), lambda i: (0, 0)),    # fused weight (resident)
                pl.BlockSpec((1, 2 * D), lambda i: (0, 0)),    # fused bias (resident)
            ],
            out_specs=pl.BlockSpec((tm, D), lambda i: (i, 0)),
        ),
        compiler_params=pltpu.CompilerParams(
            dimension_semantics=("parallel",),   # megacore-shard the row axis
            vmem_limit_bytes=vmem_limit,
        ),
        cost_estimate=cost,
    )(x2, w_cat, b_cat)

    return out.reshape(orig_shape)


def init_gtu_params(key, input_dim, dtype=jnp.float32):
    """Deterministic init mimicking nn.Linear default: U(-1/sqrt(D), 1/sqrt(D))."""
    k1, k2, k3, k4 = jax.random.split(key, 4)
    bound = 1.0 / (input_dim ** 0.5)
    wg = jax.random.uniform(k1, (input_dim, input_dim), dtype, -bound, bound)
    bg = jax.random.uniform(k2, (input_dim,), dtype, -bound, bound)
    wu = jax.random.uniform(k3, (input_dim, input_dim), dtype, -bound, bound)
    bu = jax.random.uniform(k4, (input_dim,), dtype, -bound, bound)
    return wg, bg, wu, bu


def gt_unit_reference(x, wg, bg, wu, bu):
    """Pure-JAX reference of the PyTorch forward."""
    p = jax.nn.sigmoid(x @ wg.T + bg)
    q = jnp.tanh(x @ wu.T + bu)
    return p * q + (1.0 - p) * x


if __name__ == "__main__":
    key = jax.random.PRNGKey(0)
    k_x, k_p, k_x2 = jax.random.split(key, 3)

    batch, seq, hidden = 2, 8, 32          # input_dim = 32
    x = jax.random.normal(k_x, (batch, seq, hidden), jnp.float32)
    wg, bg, wu, bu = init_gtu_params(k_p, hidden)

    # Main run: M <= tile_m path (single full-extent row block).
    out = gt_unit_forward(x, wg, bg, wu, bu)
    out = jax.block_until_ready(out)
    ref = gt_unit_reference(x, wg, bg, wu, bu)
    assert out.shape == x.shape
    assert jnp.allclose(out, ref, atol=1e-5, rtol=1e-5), "mismatch vs reference"

    # Second run: multi-step grid with a ragged (partial) trailing row block.
    x_rag = jax.random.normal(k_x2, (3, 5, hidden), jnp.float32)   # M = 15
    out_rag = gt_unit_forward(x_rag, wg, bg, wu, bu, tile_m=8)
    out_rag = jax.block_until_ready(out_rag)
    ref_rag = gt_unit_reference(x_rag, wg, bg, wu, bu)
    assert out_rag.shape == x_rag.shape
    assert jnp.allclose(out_rag, ref_rag, atol=1e-5, rtol=1e-5), "ragged mismatch"

    print("KERNEL_OK")
</pallas_src>

<mosaic_0001>
module attributes {stable_mosaic.version = 11 : i64} {
  func.func @_gtu_kernel(%arg0: i32, %arg1: memref<16x32xf32, #tpu.memory_space<vmem>>, %arg2: memref<32x64xf32, #tpu.memory_space<vmem>>, %arg3: memref<1x64xf32, #tpu.memory_space<vmem>>, %arg4: memref<16x32xf32, #tpu.memory_space<vmem>>) attributes {dimension_semantics = [#tpu.dimension_semantics<parallel>], iteration_bounds = array<i64: 1>, scalar_prefetch = 0 : i64, scratch_operands = 0 : i64, tpu.core_type = #tpu.core_type<tc>, window_params = [{transform_indices = @transform_0, window_bounds = array<i64: 16, 32>}, {pipeline_mode = #tpu.pipeline_mode<synchronous>, transform_indices = @transform_1, window_bounds = array<i64: 32, 64>}, {pipeline_mode = #tpu.pipeline_mode<synchronous>, transform_indices = @transform_2, window_bounds = array<i64: 1, 64>}, {transform_indices = @transform_3, window_bounds = array<i64: 16, 32>}]} {
    %c0 = arith.constant 0 : index
    %c0_0 = arith.constant 0 : index
    %0 = vector.load %arg1[%c0, %c0_0] : memref<16x32xf32, #tpu.memory_space<vmem>>, vector<16x32xf32>
    %c0_1 = arith.constant 0 : index
    %c0_2 = arith.constant 0 : index
    %1 = vector.load %arg2[%c0_1, %c0_2] : memref<32x64xf32, #tpu.memory_space<vmem>>, vector<32x64xf32>
    %cst = arith.constant dense<0.000000e+00> : vector<16x64xf32>
    %2 = tpu.matmul %0, %1, %cst {dimension_numbers = #tpu.dot_dimension_numbers<[1], [0], [0], [1], [0, 0, 1, 1], [], []>} : vector<16x32xf32>, vector<32x64xf32>, vector<16x64xf32> -> vector<16x64xf32>
    %c0_3 = arith.constant 0 : index
    %c0_4 = arith.constant 0 : index
    %3 = vector.load %arg3[%c0_3, %c0_4] : memref<1x64xf32, #tpu.memory_space<vmem>>, vector<1x64xf32>
    %4 = vector.broadcast %3 : vector<1x64xf32> to vector<16x64xf32>
    %5 = arith.addf %2, %4 : vector<16x64xf32>
    %6 = vector.extract_strided_slice %5 {offsets = [0, 0], sizes = [16, 32], strides = [1, 1]} : vector<16x64xf32> to vector<16x32xf32>
    %7 = arith.negf %6 : vector<16x32xf32>
    %8 = math.exp %7 : vector<16x32xf32>
    %cst_5 = arith.constant 1.000000e+00 : f32
    %9 = vector.broadcast %cst_5 : f32 to vector<16x32xf32>
    %10 = arith.addf %9, %8 : vector<16x32xf32>
    %11 = arith.divf %9, %10 : vector<16x32xf32>
    %12 = vector.extract_strided_slice %5 {offsets = [0, 32], sizes = [16, 32], strides = [1, 1]} : vector<16x64xf32> to vector<16x32xf32>
    %13 = math.tanh %12 : vector<16x32xf32>
    %14 = arith.subf %13, %0 : vector<16x32xf32>
    %15 = arith.mulf %11, %14 : vector<16x32xf32>
    %16 = arith.addf %0, %15 : vector<16x32xf32>
    %c0_6 = arith.constant 0 : index
    %c0_7 = arith.constant 0 : index
    %17 = vector.load %arg4[%c0_6, %c0_7] : memref<16x32xf32, #tpu.memory_space<vmem>>, vector<16x32xf32>
    tpu.vector_store %arg4[%c0_6, %c0_7], %16 {strides = array<i32>} : memref<16x32xf32, #tpu.memory_space<vmem>>, vector<16x32xf32>,
    return
  }
  func.func @transform_0(%arg0: i32) -> (i32, i32) {
    %c0_i32 = arith.constant 0 : i32
    %c0_i32_0 = arith.constant 0 : i32
    return %arg0, %c0_i32 : i32, i32
  }
  func.func @transform_1(%arg0: i32) -> (i32, i32) {
    %c0_i32 = arith.constant 0 : i32
    %c0_i32_0 = arith.constant 0 : i32
    %c0_i32_1 = arith.constant 0 : i32
    return %c0_i32, %c0_i32_0 : i32, i32
  }
  func.func @transform_2(%arg0: i32) -> (i32, i32) {
    %c0_i32 = arith.constant 0 : i32
    %c0_i32_0 = arith.constant 0 : i32
    %c0_i32_1 = arith.constant 0 : i32
    return %c0_i32, %c0_i32_0 : i32, i32
  }
  func.func @transform_3(%arg0: i32) -> (i32, i32) {
    %c0_i32 = arith.constant 0 : i32
    %c0_i32_0 = arith.constant 0 : i32
    return %arg0, %c0_i32 : i32, i32
  }
}

</mosaic_0001>

<bundles_post_ra>
// kernel: tpu_custom_call.1
= control target key start
LH: loop header
LB: loop body
LE: loop exit
PB: predicated region body
PF: predicated region fallthrough
CT: control target
= control target key end

     0   :  { %8 = vsyncpa [#allocation3], 0  ;;  %s351_s0 = inlined_call_operand.hbm [shape: f32[16,32], index: 0, kind: input, shape index: {}]   ;;  %s352_s1 = inlined_call_operand.hbm [shape: f32[32,64], index: 1, kind: input, shape index: {}]   ;;  %s353_s2 = inlined_call_operand.vmem [shape: f32[1,64], index: 2, kind: input, shape index: {}]   ;;  %s354_s3 = inlined_call_operand.hbm [shape: f32[16,32], index: 3, kind: output, shape index: {}]  }
   0x1   :  { %9 = vsyncpa [#allocation6], 0 }
   0x2   :  { %10 = vsyncpa [#allocation4], 0  ;;  %s299_s12 = smov [#allocation2]  }
   0x3   :  { %s16_s13 = sshll.u32 %s299_s12, 4  ;;  %s17_s13 = int_to_ptr.vmem [resolvable:$true] %s16_s13 }
   0x4   :  { %s241_s14 = scalar_lea.vmem %s17_s13, 256  ;;  %p246_p1 = scmp.lt.s32.totalorder %s17_s13, %s17_s13 }
   0x5   :  { %p242_p0 = scmp.ne.s32.totalorder %s17_s13, %s241_s14  ;;  %p247_p2 = scmp.lt.s32.totalorder %s241_s14, %s241_s14 }
   0x7   :  { %p248_p3 = por %p247_p2, %p246_p1 }
   0x9   :  { %p249_p4 = pnand %p248_p3, %p242_p0 }
   0xb   :  { %252 = shalt.err (!%p249_p4)
}
   0xc   :  { %s300_s15 = smov 128   ;;  %s301_s16 = smov 8  }
   0xd   :  { %22 = dma.hbm_to_vmem [thread:$0]  %s351_s0, 256, %s17_s13, [#allocation3], %s300_s15, %s300_s15, %s301_s16  }
   0xe   :  { %s302_s19 = smov [#allocation5]  }
   0xf   :  { %s28_s20 = sshll.u32 %s302_s19, 4  ;;  %s29_s20 = int_to_ptr.vmem [resolvable:$true] %s28_s20 }
  0x10   :  { %s261_s21 = scalar_lea.vmem %s29_s20, 512  ;;  %p266_p6 = scmp.lt.s32.totalorder %s29_s20, %s29_s20 }
  0x11   :  { %p262_p5 = scmp.ne.s32.totalorder %s29_s20, %s261_s21  ;;  %p267_p7 = scmp.lt.s32.totalorder %s261_s21, %s261_s21 }
  0x13   :  { %p268_p8 = por %p267_p7, %p266_p6 }
  0x15   :  { %p269_p9 = pnand %p268_p8, %p262_p5 }
  0x17   :  { %272 = shalt.err (!%p269_p9)
}
  0x18   :  { %34 = dma.hbm_to_vmem [thread:$0]  %s352_s1, 512, %s29_s20, [#allocation6], %s300_s15, %s300_s15, %s301_s16  }
  0x19   :  { %293 = dma.done.wait [#allocation3], 256  }
  0x1a   :  { %294 = vsyncadd [#allocation3], 4294967040 }
  0x1b   :  { %295 = dma.done.wait [#allocation6], 512  }
  0x1c   :  { %296 = vsyncadd [#allocation6], 4294966784  ;;  %vm56_vm0 = vcmask 261120   ;;  %v48_v0 = vld [vmem:[#allocation5 + $0x18] sm:$0xff]  ;;  %v47_v1 = vld [vmem:[#allocation5 + $0x10] sm:$0xff]  ;;  %s303_s0 = smov 32  }
  0x1d   :  { %203 = vmatprep.subr.mxu0 %v48_v0  ;;  %v43_v2 = vld [vmem:[#allocation2] sm:$0xff]  ;;  %v46_v3 = vld [vmem:[#allocation5 + $0x8] sm:$0xff]  ;;  %v45_v4 = vld [vmem:[#allocation5] sm:$0xff]  ;;  %s304_s25 = smov 96  }
  0x1e   :  { %204 = vmatpush3.msra.mxu0 %v48_v0  ;;  %211 = vmatprep.mubr.msk.f32.mxu0 %vm56_vm0, %v43_v2  ;;  %v44_v5 = vld [vmem:[#allocation2 + $0x8] sm:$0xff]  ;;  %v192_v7 = vld [vmem:[%s353_s2] ss:$0 sm:$0xff]  ;;  %s305_s2 = smov [#allocation7]  }
  0x1f   :  { %205 = vmatprep.subr.mxu0 %v47_v1  ;;  %152 = vrot.lane.b32.xlu0 %v43_v2, %s303_s0  ;;  %s179_s26 = sshll.u32 %s305_s2, 4  ;;  %s180_s26 = int_to_ptr.vmem [resolvable:$true] %s179_s26 }
  0x20   :  { %206 = vmatpush3.msra.mxu0 %v47_v1  ;;  %s273_s27 = scalar_lea.vmem %s180_s26, 256  ;;  %p278_p11 = scmp.lt.s32.totalorder %s180_s26, %s180_s26 }
  0x21   :  { %207 = vmatprep.subr.mxu0 %v46_v3  ;;  %p274_p10 = scmp.ne.s32.totalorder %s180_s26, %s273_s27  ;;  %p279_p12 = scmp.lt.s32.totalorder %s273_s27, %s273_s27 }
  0x22   :  { %208 = vmatpush3.msra.mxu0 %v46_v3 }
  0x23   :  { %209 = vmatprep.subr.mxu0 %v45_v4  ;;  %154 = vrot.lane.b32.xlu0 %v44_v5, %s303_s0  ;;  %p280_p13 = por %p279_p12, %p278_p11 }
  0x24   :  { %210 = vmatpush3.msra.mxu0 %v45_v4 }
  0x25   :  { %212 = vmatmul.mubr.msk.f32.vlgmr.msra.gmra.mxu0 %vm56_vm0, %v44_v5  ;;  %p281_p0 = pnand %p280_p13, %p274_p10 }
  0x91   :  { %v153_v11 = vpop.permute.xlu0 %152 }
  0x95   :  { %v155_v15 = vpop.permute.xlu0 %154 }
  0xe5   :  { %v213_v6 = vpop.f32.mrf.mxu0 }
  0xe6   :  { %v135_v10 = vadd.f32 %v213_v6, %v192_v7 }
  0xe7   :  { %v129_v8 = vpop.f32.mrf.mxu0 }
  0xe8   :  { %v130_v9 = vadd.f32 %v192_v7, %v129_v8  ;;  %v196_v18 = vmul.f32 -1.442695, %v135_v10 }
  0xea   :  { %221 = vtanh.f32 %v130_v9  ;;  %v195_v17 = vmul.f32 -1.442695, %v130_v9 }
  0xeb   :  { %223 = vtanh.f32 %v135_v10 }
  0xec   :  { %225 = vpow2.f32 %v195_v17 }
  0xed   :  { %227 = vpow2.f32 %v196_v18 }
  0xf7   :  { %v222_v12 = vpop.eup %221 }
  0xf8   :  { %v158_v13 = vsub.f32 %v222_v12, %v153_v11  ;;  %v224_v14 = vpop.eup %223 }
  0xf9   :  { %v159_v16 = vsub.f32 %v224_v14, %v155_v15  ;;  %v226_v19 = vpop.eup %225 }
  0xfa   :  { %162 = vrot.lane.b32.xlu1 %v158_v13, %s304_s25  ;;  %v144_v20 = vadd.f32 1.0, %v226_v19  ;;  %v228_v21 = vpop.eup %227 }
  0xfb   :  { %v145_v22 = vadd.f32 1.0, %v228_v21 }
  0xfc   :  { %229 = vrcp.f32 %v144_v20 }
  0xfd   :  { %231 = vrcp.f32 %v145_v22 }
  0xfe   :  { %164 = vrot.lane.b32.xlu1 %v159_v16, %s304_s25 }
 0x109   :  { %v230_v23 = vpop.eup %229 }
 0x10a   :  { %v232_v27 = vpop.eup %231 }
 0x16c   :  { %v163_v24 = vpop.permute.xlu1 %162 }
 0x16d   :  { %v168_v25 = vmul.f32 %v230_v23, %v163_v24 }
 0x16f   :  { %v170_v26 = vadd.f32 %v168_v25, %v43_v2 }
 0x170   :  { %v165_v28 = vpop.permute.xlu1 %164 }
 0x171   :  { %172 = vst.msk [vmem:[#allocation7] sm:$0xff] %vm56_vm0, %v170_v26  ;;  %v169_v29 = vmul.f32 %v232_v27, %v165_v28 }
 0x173   :  { %v171_v30 = vadd.f32 %v169_v29, %v44_v5 }
 0x175   :  { %173 = vst.msk [vmem:[#allocation7 + $0x8] sm:$0xff] %vm56_vm0, %v171_v30 }
 0x176   :  { %284 = shalt.err (!%p281_p0)
}
 0x177   :  { %185 = dma.vmem_to_hbm [thread:$0]  %s180_s26, 256, %s354_s3, [#allocation4], %s300_s15, %s300_s15, %s301_s16  }
 0x178   :  { %297 = dma.done.wait [#allocation4], 256  }
 0x179   :  { %298 = vsyncadd [#allocation4], 4294967040 }
 0x17a   :  { %189 = vsyncpa [#allocation3], 1 }
 0x17b   :  { %190 = vsyncpa [#allocation6], 1 }
 0x17c   :  { %191 = vsyncpa [#allocation4], 1 }

</bundles_post_ra>
